<compile_context>
chip_gen: v5e
topology: v5e:2x2
jax: 0.10.0
libtpu: 0.0.40
codegen_flags: <defaults>
</compile_context>

<pallas_src>
import functools

import jax
import jax.numpy as jnp
from jax.experimental import pallas as pl
from jax.experimental.pallas import tpu as pltpu


def _maxpool_stride1_kernel(col_edge_ref, row_edge_ref, x_ref, o_ref, *, W, LANES):
    # x_ref / o_ref: (TC, LANES) block, LANES = k * H * W packed planes per row.
    x = x_ref[...]

    # (1, LANES) boundary masks; jnp.where broadcasts along sublanes, so no
    # block-sized int32 temporaries are materialized.
    col_edge = col_edge_ref[...] != 0          # j == W - 1 within each plane
    row_edge = row_edge_ref[...] != 0          # i == H - 1 within each plane

    # Horizontal pass: h[i, j] = max(x[i, j], x[i, min(j + 1, W - 1)]).
    # pltpu.roll(x, LANES - 1) == jnp.roll(x, -1): right[l] = x[(l + 1) % LANES].
    # Every lane whose +1 neighbour crosses a row / plane / wraparound boundary
    # is a col_edge lane, where the jnp.where restores the replicate-pad value.
    right = pltpu.roll(x, LANES - 1, axis=1)
    right = jnp.where(col_edge, x, right)
    h = jnp.maximum(x, right)

    # Vertical pass: out[i, j] = max(h[i, j], h[min(i + 1, H - 1), j]).
    # The +W neighbour crosses a plane / wraparound boundary only on row_edge
    # lanes, which are overwritten with the replicate-pad value.
    down = pltpu.roll(h, LANES - W, axis=1)
    down = jnp.where(row_edge, h, down)
    o_ref[...] = jnp.maximum(h, down)


def _choose_lane_pack(nc, hw, max_lanes=2048):
    """Planes packed per sublane row (k). k | nc, k*hw <= ~max_lanes lanes."""
    if hw % 128 == 0:
        return 1                                  # already lane-dense
    max_k = max(1, max_lanes // hw)
    best = 1
    for k in range(1, max_k + 1):
        if nc % k == 0:
            best = k
    return best


def _choose_block_rows(nc, lanes, itemsize, target_bytes):
    """Packed rows per block.

    Big enough to amortize per-grid-step overhead, small enough that the
    double-buffered in+out tiles plus ~3 block-sized temporaries stay inside
    scoped VMEM on every generation, and (for v7x megacore) split into >= 2
    blocks whenever the input is non-trivial so both TensorCores get work.
    """
    row_bytes = lanes * itemsize
    total_bytes = nc * row_bytes
    rows = max(1, int(target_bytes // row_bytes))

    if total_bytes > 512 * 1024 and nc > 8:
        # Force >= 2 grid blocks (v7x shards the "parallel" axis over 2 TCs).
        half = ((nc + 1) // 2 + 7) // 8 * 8       # round_up(cdiv(nc, 2), 8)
        if half >= nc:
            half = 8
        rows = min(rows, half)

    if rows >= nc or nc <= 8:
        return nc                                 # one block covers everything
    rows = max(8, (rows // 8) * 8)                # keep sublane dim 8-aligned
    # TODO(synk): for very large H*W (>~256K f32 per plane) the 8-row floor can
    # exceed the VMEM budget; that needs an intra-image H-split with a 1-row
    # halo, which the flattened-lane row_edge trick cannot express.
    return min(rows, nc)


def maxpool_stride1(x, *, target_block_bytes=4 * 1024 * 1024):
    """maxpooling without changing size (2x2, stride 1, replicate pad)."""
    N, C, H, W = x.shape
    NC, HW = N * C, H * W

    # Lane packing: view k planes per sublane row (pure metadata reshape).
    k = _choose_lane_pack(NC, HW)
    nc_rows = NC // k
    LANES = k * HW
    xf = x.reshape(nc_rows, LANES)

    # Precomputed replicate-padding boundary masks over the packed lane axis.
    ids = jnp.arange(HW, dtype=jnp.int32)
    col_edge = jnp.tile((ids % W == W - 1).astype(jnp.int32), k).reshape(1, LANES)
    row_edge = jnp.tile((ids >= HW - W).astype(jnp.int32), k).reshape(1, LANES)

    tc = _choose_block_rows(nc_rows, LANES, x.dtype.itemsize, target_block_bytes)
    num_blocks = pl.cdiv(nc_rows, tc)

    kernel = functools.partial(_maxpool_stride1_kernel, W=W, LANES=LANES)

    out = pl.pallas_call(
        kernel,
        out_shape=jax.ShapeDtypeStruct((nc_rows, LANES), x.dtype),
        grid=(num_blocks,),
        in_specs=[
            pl.BlockSpec((1, LANES), lambda i: (0, 0)),    # col_edge (resident)
            pl.BlockSpec((1, LANES), lambda i: (0, 0)),    # row_edge (resident)
            pl.BlockSpec((tc, LANES), lambda i: (i, 0)),   # packed x planes
        ],
        out_specs=pl.BlockSpec((tc, LANES), lambda i: (i, 0)),
        compiler_params=pltpu.CompilerParams(
            dimension_semantics=("parallel",),
            vmem_limit_bytes=48 * 1024 * 1024,
        ),
        cost_estimate=pl.CostEstimate(
            flops=3 * NC * HW,
            transcendentals=0,
            bytes_accessed=2 * NC * HW * x.dtype.itemsize + 2 * LANES * 4,
        ),
    )(col_edge, row_edge, xf)
    return out.reshape(N, C, H, W)


def _reference(x):
    # Pure-JAX reference of F.max_pool2d(F.pad(x, (0,1,0,1), 'replicate'), 2, stride=1)
    xp = jnp.pad(x, ((0, 0), (0, 0), (0, 1), (0, 1)), mode="edge")
    return jnp.maximum(
        jnp.maximum(xp[:, :, :-1, :-1], xp[:, :, :-1, 1:]),
        jnp.maximum(xp[:, :, 1:, :-1], xp[:, :, 1:, 1:]),
    )


if __name__ == "__main__":
    key = jax.random.PRNGKey(0)

    # Primary small test (module-consistent shape).
    x = jax.random.normal(key, (2, 4, 16, 16), dtype=jnp.float32)
    y = maxpool_stride1(x)
    jax.block_until_ready(y)
    assert y.shape == x.shape and y.dtype == x.dtype
    assert jnp.allclose(y, _reference(x)), "mismatch on (2,4,16,16)"

    # Real YOLOv2-style 13x13 map: exercises the lane-packing path (k=8).
    k2, k3 = jax.random.split(key)
    x13 = jax.random.normal(k2, (2, 8, 13, 13), dtype=jnp.float32)
    y13 = maxpool_stride1(x13)
    jax.block_until_ready(y13)
    assert jnp.allclose(y13, _reference(x13)), "mismatch on (2,8,13,13)"

    # Larger input: exercises the multi-block (>= 2 grid steps) path.
    xbig = jax.random.normal(k3, (2, 128, 32, 32), dtype=jnp.float32)
    ybig = maxpool_stride1(xbig)
    jax.block_until_ready(ybig)
    assert jnp.allclose(ybig, _reference(xbig)), "mismatch on (2,128,32,32)"

    print("KERNEL_OK")
</pallas_src>

<mosaic_0001>
module attributes {stable_mosaic.version = 11 : i64} {
  func.func @_maxpool_stride1_kernel(%arg0: i32, %arg1: memref<1x256xi32, #tpu.memory_space<vmem>>, %arg2: memref<1x256xi32, #tpu.memory_space<vmem>>, %arg3: memref<8x256xf32, #tpu.memory_space<vmem>>, %arg4: memref<8x256xf32, #tpu.memory_space<vmem>>) attributes {dimension_semantics = [#tpu.dimension_semantics<parallel>], iteration_bounds = array<i64: 1>, scalar_prefetch = 0 : i64, scratch_operands = 0 : i64, tpu.core_type = #tpu.core_type<tc>, window_params = [{pipeline_mode = #tpu.pipeline_mode<synchronous>, transform_indices = @transform_0, window_bounds = array<i64: 1, 256>}, {pipeline_mode = #tpu.pipeline_mode<synchronous>, transform_indices = @transform_1, window_bounds = array<i64: 1, 256>}, {transform_indices = @transform_2, window_bounds = array<i64: 8, 256>}, {transform_indices = @transform_3, window_bounds = array<i64: 8, 256>}]} {
    %c0 = arith.constant 0 : index
    %c0_0 = arith.constant 0 : index
    %0 = vector.load %arg3[%c0, %c0_0] : memref<8x256xf32, #tpu.memory_space<vmem>>, vector<8x256xf32>
    %c0_1 = arith.constant 0 : index
    %c0_2 = arith.constant 0 : index
    %1 = vector.load %arg1[%c0_1, %c0_2] : memref<1x256xi32, #tpu.memory_space<vmem>>, vector<1x256xi32>
    %c0_i32 = arith.constant 0 : i32
    %2 = vector.broadcast %c0_i32 : i32 to vector<1x256xi32>
    %3 = arith.cmpi ne, %1, %2 : vector<1x256xi32>
    %c0_3 = arith.constant 0 : index
    %c0_4 = arith.constant 0 : index
    %4 = vector.load %arg2[%c0_3, %c0_4] : memref<1x256xi32, #tpu.memory_space<vmem>>, vector<1x256xi32>
    %c0_i32_5 = arith.constant 0 : i32
    %5 = vector.broadcast %c0_i32_5 : i32 to vector<1x256xi32>
    %6 = arith.cmpi ne, %4, %5 : vector<1x256xi32>
    %c255_i32 = arith.constant 255 : i32
    %7 = tpu.dynamic_rotate %0 by %c255_i32 dim 1 : vector<8x256xf32>, i32 -> vector<8x256xf32>
    %8 = vector.shape_cast %3 : vector<1x256xi1> to vector<1x256xi1>
    %9 = vector.broadcast %8 : vector<1x256xi1> to vector<8x256xi1>
    %10 = arith.select %9, %0, %7 : vector<8x256xi1>, vector<8x256xf32>
    %11 = arith.maximumf %0, %10 : vector<8x256xf32>
    %c240_i32 = arith.constant 240 : i32
    %12 = tpu.dynamic_rotate %11 by %c240_i32 dim 1 : vector<8x256xf32>, i32 -> vector<8x256xf32>
    %13 = vector.shape_cast %6 : vector<1x256xi1> to vector<1x256xi1>
    %14 = vector.broadcast %13 : vector<1x256xi1> to vector<8x256xi1>
    %15 = arith.select %14, %11, %12 : vector<8x256xi1>, vector<8x256xf32>
    %16 = arith.maximumf %11, %15 : vector<8x256xf32>
    %c0_6 = arith.constant 0 : index
    %c0_7 = arith.constant 0 : index
    %17 = vector.load %arg4[%c0_6, %c0_7] : memref<8x256xf32, #tpu.memory_space<vmem>>, vector<8x256xf32>
    tpu.vector_store %arg4[%c0_6, %c0_7], %16 {strides = array<i32>} : memref<8x256xf32, #tpu.memory_space<vmem>>, vector<8x256xf32>,
    return
  }
  func.func @transform_0(%arg0: i32) -> (i32, i32) {
    %c0_i32 = arith.constant 0 : i32
    %c0_i32_0 = arith.constant 0 : i32
    %c0_i32_1 = arith.constant 0 : i32
    return %c0_i32, %c0_i32_0 : i32, i32
  }
  func.func @transform_1(%arg0: i32) -> (i32, i32) {
    %c0_i32 = arith.constant 0 : i32
    %c0_i32_0 = arith.constant 0 : i32
    %c0_i32_1 = arith.constant 0 : i32
    return %c0_i32, %c0_i32_0 : i32, i32
  }
  func.func @transform_2(%arg0: i32) -> (i32, i32) {
    %c0_i32 = arith.constant 0 : i32
    %c0_i32_0 = arith.constant 0 : i32
    return %arg0, %c0_i32 : i32, i32
  }
  func.func @transform_3(%arg0: i32) -> (i32, i32) {
    %c0_i32 = arith.constant 0 : i32
    %c0_i32_0 = arith.constant 0 : i32
    return %arg0, %c0_i32 : i32, i32
  }
}

</mosaic_0001>

<bundles_post_ra>
// kernel: tpu_custom_call.1
= control target key start
LH: loop header
LB: loop body
LE: loop exit
PB: predicated region body
PF: predicated region fallthrough
CT: control target
= control target key end

     0   :  { %8 = vsyncpa [#allocation3], 0  ;;  %s264_s0 = inlined_call_operand.hbm [shape: s32[1,256], index: 0, kind: input, shape index: {}]   ;;  %s265_s1 = inlined_call_operand.hbm [shape: s32[1,256], index: 1, kind: input, shape index: {}]   ;;  %s266_s2 = inlined_call_operand.hbm [shape: f32[8,256], index: 2, kind: input, shape index: {}]   ;;  %s267_s3 = inlined_call_operand.hbm [shape: f32[8,256], index: 3, kind: output, shape index: {}]  }
   0x1   :  { %9 = vsyncpa [#allocation6], 0  ;;  %s27_s14 = sshll.u32 %s265_s1, 4  ;;  %s28_s14 = int_to_ptr.hbm [resolvable:$true] %s27_s14 }
   0x2   :  { %10 = vsyncpa [#allocation4], 0  ;;  %s225_s15 = smov [#allocation5]   ;;  %s16_s19 = sshll.u32 %s264_s0, 4  ;;  %s17_s19 = int_to_ptr.hbm [resolvable:$true] %s16_s19 }
   0x3   :  { %s29_s16 = sshll.u32 %s225_s15, 4  ;;  %s226_s20 = smov [#allocation2]   ;;  %s30_s16 = int_to_ptr.vmem [resolvable:$true] %s29_s16 }
   0x4   :  { %32 = dma.hbm_to_vmem [thread:$0]  %s28_s14, 32, %s30_s16, [#allocation6]  }
   0x5   :  { %s18_s21 = sshll.u32 %s226_s20, 4  ;;  %s38_s24 = sshll.u32 %s266_s2, 4  ;;  %s19_s21 = int_to_ptr.vmem [resolvable:$true] %s18_s21  ;;  %s39_s24 = int_to_ptr.hbm [resolvable:$true] %s38_s24 }
   0x6   :  { %21 = dma.hbm_to_vmem [thread:$0]  %s17_s19, 32, %s19_s21, [#allocation3]  }
   0x7   :  { %s227_s1 = smov [#allocation7]  }
   0x8   :  { %s40_s25 = sshll.u32 %s227_s1, 4  ;;  %s41_s25 = int_to_ptr.vmem [resolvable:$true] %s40_s25 }
   0x9   :  { %43 = dma.hbm_to_vmem [thread:$0]  %s39_s24, 256, %s41_s25, [#allocation6]  }
   0xa   :  { %219 = dma.done.wait [#allocation3], 32  }
   0xb   :  { %220 = vsyncadd [#allocation3], 4294967264 }
   0xc   :  { %221 = dma.done.wait [#allocation6], 288  }
   0xd   :  { %222 = vsyncadd [#allocation6], 4294967008  ;;  %v56_v0 = vld [vmem:[#allocation7] sm:$0xff]  ;;  %s228_s0 = smov 127   ;;  %v57_v1 = vld [vmem:[#allocation7 + $0x8] sm:$0xff]  ;;  %v66_v3 = vlaneseq  ;;  %v229_v5 = vmov 0  }
   0xe   :  { %62 = vrot.lane.b32.xlu0 %v56_v0, %s228_s0  ;;  %v58_v2 = vld [vmem:[#allocation2] sm:$0x3]  ;;  %s230_s2 = smov 112   ;;  %v60_v17 = vld [vmem:[#allocation5] sm:$0x3]  ;;  %s231_s26 = smov [#allocation8]  }
   0xf   :  { %vm59_vm0 = vcmp.ne.s32.totalorder %v58_v2, 0  ;;  %v67_v7 = vand.u32 127, %v66_v3  ;;  %vm61_vm4 = vcmp.ne.s32.totalorder %v60_v17, 0  ;;  %s103_s27 = sshll.u32 %s231_s26, 4  ;;  %s105_s30 = sshll.u32 %s267_s3, 4  ;;  %s104_s27 = int_to_ptr.vmem [resolvable:$true] %s103_s27  ;;  %s106_s30 = int_to_ptr.hbm [resolvable:$true] %s105_s30 }
  0x10   :  { %v71_v6 = vsel %vm59_vm0, 1, %v229_v5  ;;  %v87_v19 = vsel %vm61_vm4, 1, %v229_v5 }
  0x11   :  { %v72_v8 = vperm.slane %v71_v6, 0  ;;  %vm68_vm1 = vcmp.lt.s32.totalorder %v67_v7, 127  ;;  %v73_v10 = vperm.slane %v71_v6, 1  ;;  %v88_v20 = vperm.slane %v87_v19, 0 }
  0x12   :  { %v89_v21 = vperm.slane %v87_v19, 1  ;;  %vm84_vm5 = vcmp.lt.s32.totalorder %v67_v7, 112 }
  0x13   :  { %vm74_vm2 = vcmp.eq.s32.totalorder %v72_v8, 1  ;;  %vm75_vm3 = vcmp.eq.s32.totalorder %v73_v10, 1  ;;  %vm90_vm6 = vcmp.eq.s32.totalorder %v88_v20, 1 }
  0x14   :  { %vm91_vm7 = vcmp.eq.s32.totalorder %v89_v21, 1 }
  0x16   :  { %64 = vrot.lane.b32.xlu0 %v57_v1, %s228_s0 }
  0x80   :  { %v63_v4 = vpop.permute.xlu0 %62 }
  0x88   :  { %v65_v9 = vpop.permute.xlu0 %64 }
  0x89   :  { %v69_v11 = vsel %vm68_vm1, %v63_v4, %v65_v9  ;;  %v70_v14 = vsel %vm68_vm1, %v65_v9, %v63_v4 }
  0x8a   :  { %v76_v12 = vsel %vm74_vm2, %v56_v0, %v69_v11  ;;  %v77_v15 = vsel %vm75_vm3, %v57_v1, %v70_v14 }
  0x8b   :  { %v78_v13 = vmax.f32 %v56_v0, %v76_v12  ;;  %v79_v16 = vmax.f32 %v57_v1, %v77_v15 }
  0x8d   :  { %80 = vrot.lane.b32.xlu1 %v78_v13, %s230_s2 }
  0x95   :  { %82 = vrot.lane.b32.xlu1 %v79_v16, %s230_s2 }
  0xff   :  { %v81_v18 = vpop.permute.xlu1 %80 }
 0x107   :  { %v83_v22 = vpop.permute.xlu1 %82 }
 0x108   :  { %v85_v23 = vsel %vm84_vm5, %v81_v18, %v83_v22  ;;  %v86_v24 = vsel %vm84_vm5, %v83_v22, %v81_v18 }
 0x109   :  { %v92_v25 = vsel %vm90_vm6, %v78_v13, %v85_v23  ;;  %v93_v26 = vsel %vm91_vm7, %v79_v16, %v86_v24 }
 0x10a   :  { %v94_v27 = vmax.f32 %v78_v13, %v92_v25  ;;  %v95_v28 = vmax.f32 %v79_v16, %v93_v26 }
 0x10c   :  { %96 = vst [vmem:[#allocation8] sm:$0xff] %v94_v27 }
 0x10d   :  { %97 = vst [vmem:[#allocation8 + $0x8] sm:$0xff] %v95_v28 }
 0x10e   :  { %108 = dma.vmem_to_hbm [thread:$0]  %s104_s27, 256, %s106_s30, [#allocation4]  }
 0x10f   :  { %223 = dma.done.wait [#allocation4], 256  }
 0x110   :  { %224 = vsyncadd [#allocation4], 4294967040 }
 0x111   :  { %113 = vsyncpa [#allocation3], 1 }
 0x112   :  { %114 = vsyncpa [#allocation6], 1 }
 0x113   :  { %115 = vsyncpa [#allocation4], 1 }

</bundles_post_ra>
